<compile_context>
chip_gen: v6e
topology: v6e:2x2x1
jax: 0.10.0
libtpu: 0.0.40
codegen_flags: <defaults>
</compile_context>

<pallas_src>
import functools
import math

import jax
import jax.numpy as jnp
import numpy as np
from jax.experimental import pallas as pl
from jax.experimental.pallas import tpu as pltpu


# ------------------------------ helpers ------------------------------

def _pick_tile(dim, target):
    """Largest power-of-two-ish tile <= target that divides dim (fallback: dim)."""
    if dim <= target:
        return dim
    t = target
    while t >= 8:
        if dim % t == 0:
            return t
        t //= 2
    return dim


# ----------------------------- Pallas kernels -----------------------------

def _matmul_kernel(x_ref, w_ref, o_ref, acc_ref):
    """Tiled GEMM with f32 VMEM accumulator (K is the innermost grid axis)."""
    @pl.when(pl.program_id(2) == 0)
    def _init():
        acc_ref[...] = jnp.zeros_like(acc_ref)

    acc_ref[...] += jnp.dot(
        x_ref[...], w_ref[...], preferred_element_type=jnp.float32
    )

    @pl.when(pl.program_id(2) == pl.num_programs(2) - 1)
    def _store():
        o_ref[...] = acc_ref[...].astype(o_ref.dtype)


def linear_pallas(x2d, wt, *, tm_target=256, tn_target=512, tk_target=512):
    """bias-free linear: (M, K) @ wt with wt pre-transposed to (K, N)."""
    M, K = x2d.shape
    Kw, N = wt.shape
    assert K == Kw
    tm = _pick_tile(M, tm_target)
    tn = _pick_tile(N, tn_target)
    tk = _pick_tile(K, tk_target)
    grid = (M // tm, N // tn, K // tk)
    return pl.pallas_call(
        _matmul_kernel,
        out_shape=jax.ShapeDtypeStruct((M, N), x2d.dtype),
        grid_spec=pltpu.PrefetchScalarGridSpec(
            num_scalar_prefetch=0,
            grid=grid,
            in_specs=[
                pl.BlockSpec((tm, tk), lambda i, j, k: (i, k)),
                pl.BlockSpec((tk, tn), lambda i, j, k: (k, j)),
            ],
            out_specs=pl.BlockSpec((tm, tn), lambda i, j, k: (i, j)),
            scratch_shapes=[pltpu.VMEM((tm, tn), jnp.float32)],
        ),
        compiler_params=pltpu.CompilerParams(
            dimension_semantics=("parallel", "parallel", "arbitrary")
        ),
    )(x2d, wt)


def _flash_attn_kernel(q_ref, k_ref, v_ref, o_ref, m_ref, l_ref, acc_ref, *, scale):
    """One (batch, head) pair, one L-tile per grid step; online softmax."""
    l_idx = pl.program_id(2)

    @pl.when(l_idx == 0)
    def _init():
        m_ref[...] = jnp.full_like(m_ref, -jnp.inf)
        l_ref[...] = jnp.zeros_like(l_ref)
        acc_ref[...] = jnp.zeros_like(acc_ref)

    # Fold 1/sqrt(D) into q (S,D) instead of scaling the (S,L) score matrix.
    q = q_ref[0, 0] * scale          # (S, D), input dtype
    k = k_ref[0, 0]                  # (Lt, D)
    v = v_ref[0, 0]                  # (Lt, D)

    # scores = q @ k^T  (contract head_dim, f32 accumulation on the MXU)
    s = jax.lax.dot_general(
        q, k, (((1,), (1,)), ((), ())), preferred_element_type=jnp.float32
    )                                # (S, Lt)

    m_prev = m_ref[...]                                   # (S, 1)
    m_new = jnp.maximum(m_prev, jnp.max(s, axis=-1, keepdims=True))
    alpha = jnp.exp(m_prev - m_new)                       # rescale factor
    p = jnp.exp(s - m_new)                                # (S, Lt) f32
    l_ref[...] = alpha * l_ref[...] + jnp.sum(p, axis=-1, keepdims=True)
    acc_ref[...] = alpha * acc_ref[...] + jnp.dot(
        p.astype(v.dtype), v, preferred_element_type=jnp.float32
    )
    m_ref[...] = m_new

    @pl.when(l_idx == pl.num_programs(2) - 1)
    def _done():
        inv_l = pl.reciprocal(l_ref[...], approx=True)
        o_ref[0, 0] = (acc_ref[...] * inv_l).astype(o_ref.dtype)


def attention_pallas(q, k, v, n_rep, scale, *, l_tile_target=512):
    """q: (B, H, S, D); k, v: (B, Hkv, L, D) -> (B, H, S, D).

    GQA sharing happens in the K/V index_map (kv head = h // n_rep), so no
    repeat_kv copy and no duplicate K/V DMA traffic.
    """
    B, H, S, D = q.shape
    _, Hkv, L, _ = k.shape
    lt = _pick_tile(L, l_tile_target)
    grid = (B, H, L // lt)
    return pl.pallas_call(
        functools.partial(_flash_attn_kernel, scale=scale),
        out_shape=jax.ShapeDtypeStruct((B, H, S, D), q.dtype),
        grid_spec=pltpu.PrefetchScalarGridSpec(
            num_scalar_prefetch=0,
            grid=grid,
            in_specs=[
                pl.BlockSpec((1, 1, S, D), lambda b, h, l: (b, h, 0, 0)),
                pl.BlockSpec((1, 1, lt, D), lambda b, h, l: (b, h // n_rep, l, 0)),
                pl.BlockSpec((1, 1, lt, D), lambda b, h, l: (b, h // n_rep, l, 0)),
            ],
            out_specs=pl.BlockSpec((1, 1, S, D), lambda b, h, l: (b, h, 0, 0)),
            scratch_shapes=[
                pltpu.VMEM((S, 1), jnp.float32),   # running max
                pltpu.VMEM((S, 1), jnp.float32),   # running sum
                pltpu.VMEM((S, D), jnp.float32),   # output accumulator
            ],
        ),
        compiler_params=pltpu.CompilerParams(
            dimension_semantics=("parallel", "parallel", "arbitrary")
        ),
    )(q, k, v)


# ------------------------------ JAX glue ops ------------------------------

def apply_rotary_embeddings(x, cos, sin):
    """Interleaved (complex-pair) RoPE, identical to torch.view_as_complex path.

    x: (B, S, H, D); cos/sin: (S, D//2).
    """
    B, S, H, D = x.shape
    xr = x.astype(jnp.float32).reshape(B, S, H, D // 2, 2)
    x0, x1 = xr[..., 0], xr[..., 1]
    c = cos[None, :, None, :]
    s = sin[None, :, None, :]
    o0 = x0 * c - x1 * s
    o1 = x0 * s + x1 * c
    return jnp.stack([o0, o1], axis=-1).reshape(B, S, H, D).astype(x.dtype)


def repeat_kv(x, n_rep):
    if n_rep == 1:
        return x
    b, s, h, d = x.shape
    return jnp.broadcast_to(
        x[:, :, :, None, :], (b, s, h, n_rep, d)
    ).reshape(b, s, h * n_rep, d)


def precompute_freqs(head_dim, start_pos, seq_len, theta=10000.0):
    inv = 1.0 / (theta ** (jnp.arange(0, head_dim, 2, dtype=jnp.float32) / head_dim))
    pos = jnp.arange(start_pos, start_pos + seq_len, dtype=jnp.float32)
    ang = jnp.outer(pos, inv)  # (seq_len, head_dim // 2)
    return jnp.cos(ang), jnp.sin(ang)


# ----------------------------- the module port -----------------------------

class SelfAttentionPallas:
    def __init__(self, dim, n_heads, n_kv_heads, max_batch_size, max_seq_len, key):
        self.n_kv_heads = n_kv_heads
        self.n_heads_q = n_heads
        self.n_rep = n_heads // n_kv_heads
        self.head_dim = dim // n_heads

        k1, k2, k3, k4 = jax.random.split(key, 4)
        bound = 1.0 / math.sqrt(dim)
        # PyTorch (out_features, in_features) layout, kept for the reference.
        self.wq = jax.random.uniform(
            k1, (n_heads * self.head_dim, dim), jnp.float32, -bound, bound)
        self.wk = jax.random.uniform(
            k2, (n_kv_heads * self.head_dim, dim), jnp.float32, -bound, bound)
        self.wv = jax.random.uniform(
            k3, (n_kv_heads * self.head_dim, dim), jnp.float32, -bound, bound)
        bound_o = 1.0 / math.sqrt(n_heads * self.head_dim)
        self.wo = jax.random.uniform(
            k4, (dim, n_heads * self.head_dim), jnp.float32, -bound_o, bound_o)

        # Pre-transposed / fused kernel weights (built once, not per call).
        self.w_qkv_t = jnp.concatenate(
            [self.wq.T, self.wk.T, self.wv.T], axis=1)      # (dim, (H+2*Hkv)*D)
        self.wo_t = self.wo.T                                # (H*D, dim)

        # KV cache stored as (B, Hkv, max_seq, D) so attention reads it without
        # transposing the long L axis.
        self.cache_k = jnp.zeros(
            (max_batch_size, n_kv_heads, max_seq_len, self.head_dim), jnp.float32)
        self.cache_v = jnp.zeros(
            (max_batch_size, n_kv_heads, max_seq_len, self.head_dim), jnp.float32)

    def __call__(self, x, start_pos, freqs_cos, freqs_sin):
        B, S, dim = x.shape
        H, Hkv, D = self.n_heads_q, self.n_kv_heads, self.head_dim
        x2d = x.reshape(B * S, dim)

        # Fused Q/K/V projection: one tiled GEMM, one HBM read of x.
        qkv = linear_pallas(x2d, self.w_qkv_t)               # (B*S, (H+2*Hkv)*D)
        q_sz, kv_sz = H * D, Hkv * D
        xq = qkv[:, :q_sz].reshape(B, S, H, D)
        xk = qkv[:, q_sz:q_sz + kv_sz].reshape(B, S, Hkv, D)
        xv = qkv[:, q_sz + kv_sz:].reshape(B, S, Hkv, D)

        # rotary embeddings (tiny elementwise glue)
        xq = apply_rotary_embeddings(xq, freqs_cos, freqs_sin)
        xk = apply_rotary_embeddings(xk, freqs_cos, freqs_sin)

        # functional KV-cache update + read.
        # TODO(synk): write K/V into the cache via input_output_aliases scatter
        # kernel instead of the functional .at[].set copy.
        xk_t = xk.transpose(0, 2, 1, 3)                       # (B, Hkv, S, D)
        xv_t = xv.transpose(0, 2, 1, 3)
        self.cache_k = self.cache_k.at[:B, :, start_pos:start_pos + S].set(xk_t)
        self.cache_v = self.cache_v.at[:B, :, start_pos:start_pos + S].set(xv_t)
        L = start_pos + S
        keys = self.cache_k[:B, :, :L]                        # (B, Hkv, L, D)
        values = self.cache_v[:B, :, :L]                      # (B, Hkv, L, D)

        # flash-style attention; GQA sharing handled inside the kernel grid.
        q = xq.transpose(0, 2, 1, 3)                          # (B, H, S, D)
        out = attention_pallas(q, keys, values, self.n_rep, 1.0 / math.sqrt(D))

        # output projection (tiled GEMM) on the 2-D activation.
        out2d = out.transpose(0, 2, 1, 3).reshape(B * S, H * D)
        return linear_pallas(out2d, self.wo_t).reshape(B, S, dim)


# ------------------------------ pure-JAX reference ------------------------------

def reference_forward(x, start_pos, cos, sin, attn, max_seq):
    B, S, dim = x.shape
    H, Hkv, D = attn.n_heads_q, attn.n_kv_heads, attn.head_dim
    x2d = x.reshape(B * S, dim)
    xq = (x2d @ attn.wq.T).reshape(B, S, H, D)
    xk = (x2d @ attn.wk.T).reshape(B, S, Hkv, D)
    xv = (x2d @ attn.wv.T).reshape(B, S, Hkv, D)
    xq = apply_rotary_embeddings(xq, cos, sin)
    xk = apply_rotary_embeddings(xk, cos, sin)
    cache_k = jnp.zeros((B, max_seq, Hkv, D), jnp.float32)
    cache_v = jnp.zeros((B, max_seq, Hkv, D), jnp.float32)
    cache_k = cache_k.at[:, start_pos:start_pos + S].set(xk)
    cache_v = cache_v.at[:, start_pos:start_pos + S].set(xv)
    keys = repeat_kv(cache_k[:, :start_pos + S], attn.n_rep)
    values = repeat_kv(cache_v[:, :start_pos + S], attn.n_rep)
    q = xq.transpose(0, 2, 1, 3)
    k = keys.transpose(0, 2, 1, 3)
    v = values.transpose(0, 2, 1, 3)
    scores = jnp.einsum("bhsd,bhld->bhsl", q, k) / math.sqrt(D)
    probs = jax.nn.softmax(scores.astype(jnp.float32), axis=-1)
    out = jnp.einsum("bhsl,bhld->bhsd", probs, v)
    out = out.transpose(0, 2, 1, 3).reshape(B, S, H * D)
    return out @ attn.wo.T


# ----------------------------------- main -----------------------------------

if __name__ == "__main__":
    # Small shapes consistent with the module: dim=32, 4 query heads, 2 kv heads.
    B, S, dim = 2, 8, 32
    n_heads, n_kv_heads = 4, 2
    max_batch, max_seq = 2, 16
    start_pos = 4  # exercises the KV-cache prefix (zeros before start_pos)

    key = jax.random.PRNGKey(0)
    kx, kw = jax.random.split(key)
    x = jax.random.normal(kx, (B, S, dim), jnp.float32)

    attn = SelfAttentionPallas(dim, n_heads, n_kv_heads, max_batch, max_seq, kw)
    cos, sin = precompute_freqs(dim // n_heads, start_pos, S)

    ref = reference_forward(x, start_pos, cos, sin, attn, max_seq)
    out = attn(x, start_pos, cos, sin)
    out = jax.block_until_ready(out)

    # Tolerance accounts for the EUP approximate reciprocal in the softmax.
    np.testing.assert_allclose(np.asarray(out), np.asarray(ref), rtol=2e-3, atol=2e-3)
    print("KERNEL_OK")
</pallas_src>

<mosaic_0001>
module attributes {stable_mosaic.version = 11 : i64} {
  func.func @_matmul_kernel(%arg0: i32, %arg1: i32, %arg2: i32, %arg3: memref<16x32xf32, #tpu.memory_space<vmem>>, %arg4: memref<32x64xf32, #tpu.memory_space<vmem>>, %arg5: memref<16x64xf32, #tpu.memory_space<vmem>>, %arg6: memref<16x64xf32, #tpu.memory_space<vmem>>) attributes {dimension_semantics = [#tpu.dimension_semantics<parallel>, #tpu.dimension_semantics<parallel>, #tpu.dimension_semantics<arbitrary>], iteration_bounds = array<i64: 1, 1, 1>, scalar_prefetch = 0 : i64, scratch_operands = 1 : i64, tpu.core_type = #tpu.core_type<tc>, window_params = [{transform_indices = @transform_0, window_bounds = array<i64: 16, 32>}, {transform_indices = @transform_1, window_bounds = array<i64: 32, 64>}, {transform_indices = @transform_2, window_bounds = array<i64: 16, 64>}]} {
    %c0_i32 = arith.constant 0 : i32
    %0 = arith.cmpi eq, %arg2, %c0_i32 : i32
    %1 = arith.extui %0 : i1 to i32
    %c0_i32_0 = arith.constant 0 : i32
    %2 = arith.cmpi ne, %1, %c0_i32_0 : i32
    scf.if %2 {
      %cst_10 = arith.constant 0.000000e+00 : f32
      %12 = vector.broadcast %cst_10 : f32 to vector<16x64xf32>
      %c0_11 = arith.constant 0 : index
      %c0_12 = arith.constant 0 : index
      %13 = vector.load %arg6[%c0_11, %c0_12] : memref<16x64xf32, #tpu.memory_space<vmem>>, vector<16x64xf32>
      tpu.vector_store %arg6[%c0_11, %c0_12], %12 {strides = array<i32>} : memref<16x64xf32, #tpu.memory_space<vmem>>, vector<16x64xf32>,
    } else {
    }
    %c0 = arith.constant 0 : index
    %c0_1 = arith.constant 0 : index
    %3 = vector.load %arg6[%c0, %c0_1] : memref<16x64xf32, #tpu.memory_space<vmem>>, vector<16x64xf32>
    %c0_2 = arith.constant 0 : index
    %c0_3 = arith.constant 0 : index
    %4 = vector.load %arg3[%c0_2, %c0_3] : memref<16x32xf32, #tpu.memory_space<vmem>>, vector<16x32xf32>
    %c0_4 = arith.constant 0 : index
    %c0_5 = arith.constant 0 : index
    %5 = vector.load %arg4[%c0_4, %c0_5] : memref<32x64xf32, #tpu.memory_space<vmem>>, vector<32x64xf32>
    %cst = arith.constant dense<0.000000e+00> : vector<16x64xf32>
    %6 = tpu.matmul %4, %5, %cst {dimension_numbers = #tpu.dot_dimension_numbers<[1], [0], [0], [1], [0, 0, 1, 1], [], []>} : vector<16x32xf32>, vector<32x64xf32>, vector<16x64xf32> -> vector<16x64xf32>
    %7 = arith.addf %3, %6 : vector<16x64xf32>
    %c0_6 = arith.constant 0 : index
    %c0_7 = arith.constant 0 : index
    %8 = vector.load %arg6[%c0_6, %c0_7] : memref<16x64xf32, #tpu.memory_space<vmem>>, vector<16x64xf32>
    tpu.vector_store %arg6[%c0_6, %c0_7], %7 {strides = array<i32>} : memref<16x64xf32, #tpu.memory_space<vmem>>, vector<16x64xf32>,
    %c0_i32_8 = arith.constant 0 : i32
    %9 = arith.cmpi eq, %arg2, %c0_i32_8 : i32
    %10 = arith.extui %9 : i1 to i32
    %c0_i32_9 = arith.constant 0 : i32
    %11 = arith.cmpi ne, %10, %c0_i32_9 : i32
    scf.if %11 {
      %c0_10 = arith.constant 0 : index
      %c0_11 = arith.constant 0 : index
      %12 = vector.load %arg6[%c0_10, %c0_11] : memref<16x64xf32, #tpu.memory_space<vmem>>, vector<16x64xf32>
      %c0_12 = arith.constant 0 : index
      %c0_13 = arith.constant 0 : index
      %13 = vector.load %arg5[%c0_12, %c0_13] : memref<16x64xf32, #tpu.memory_space<vmem>>, vector<16x64xf32>
      tpu.vector_store %arg5[%c0_12, %c0_13], %12 {strides = array<i32>} : memref<16x64xf32, #tpu.memory_space<vmem>>, vector<16x64xf32>,
    } else {
    }
    return
  }
  func.func @transform_0(%arg0: i32, %arg1: i32, %arg2: i32) -> (i32, i32) {
    %c0_i32 = arith.constant 0 : i32
    return %arg0, %arg2 : i32, i32
  }
  func.func @transform_1(%arg0: i32, %arg1: i32, %arg2: i32) -> (i32, i32) {
    %c0_i32 = arith.constant 0 : i32
    return %arg2, %arg1 : i32, i32
  }
  func.func @transform_2(%arg0: i32, %arg1: i32, %arg2: i32) -> (i32, i32) {
    %c0_i32 = arith.constant 0 : i32
    return %arg0, %arg1 : i32, i32
  }
}

</mosaic_0001>

<bundles_post_ra>
// kernel: tpu_custom_call.1
= control target key start
LH: loop header
LB: loop body
LE: loop exit
PB: predicated region body
PF: predicated region fallthrough
CT: control target
= control target key end

     0   :  { %7 = vsyncpa [#allocation4], 0  ;;  %s305_s0 = inlined_call_operand.hbm [shape: f32[16,32], index: 0, kind: input, shape index: {}]   ;;  %s306_s1 = inlined_call_operand.hbm [shape: f32[32,64], index: 1, kind: input, shape index: {}]   ;;  %s307_s2 = inlined_call_operand.hbm [shape: f32[16,64], index: 2, kind: output, shape index: {}]  }
   0x1   :  { %8 = vsyncpa [#allocation7], 0 }
   0x2   :  { %9 = vsyncpa [#allocation5], 0  ;;  %s258_s9 = smov [#allocation3]  }
   0x3   :  { %s15_s10 = sshll.u32 %s258_s9, 4  ;;  %s16_s10 = int_to_ptr.vmem [resolvable:$true] %s15_s10 }
   0x4   :  { %s200_s11 = scalar_lea.vmem %s16_s10, 256  ;;  %p205_p1 = scmp.lt.s32.totalorder %s16_s10, %s16_s10 }
   0x5   :  { %p201_p0 = scmp.ne.s32.totalorder %s16_s10, %s200_s11  ;;  %p206_p2 = scmp.lt.s32.totalorder %s200_s11, %s200_s11 }
   0x7   :  { %p207_p3 = por %p206_p2, %p205_p1 }
   0x9   :  { %p208_p4 = pnand %p207_p3, %p201_p0 }
   0xb   :  { %211 = shalt.err (!%p208_p4)
}
   0xc   :  { %s259_s12 = smov 128   ;;  %s260_s13 = smov 8  }
   0xd   :  { %21 = dma.hbm_to_vmem [thread:$0]  %s305_s0, 256, %s16_s10, [#allocation4], %s259_s12, %s259_s12, %s260_s13  }
   0xe   :  { %s261_s16 = smov [#allocation6]  }
   0xf   :  { %s27_s17 = sshll.u32 %s261_s16, 4  ;;  %s28_s17 = int_to_ptr.vmem [resolvable:$true] %s27_s17 }
  0x10   :  { %s220_s18 = scalar_lea.vmem %s28_s17, 512  ;;  %p225_p6 = scmp.lt.s32.totalorder %s28_s17, %s28_s17 }
  0x11   :  { %p221_p5 = scmp.ne.s32.totalorder %s28_s17, %s220_s18  ;;  %p226_p7 = scmp.lt.s32.totalorder %s220_s18, %s220_s18 }
  0x13   :  { %p227_p8 = por %p226_p7, %p225_p6 }
  0x15   :  { %p228_p9 = pnand %p227_p8, %p221_p5 }
  0x17   :  { %231 = shalt.err (!%p228_p9)
}
  0x18   :  { %33 = dma.hbm_to_vmem [thread:$0]  %s306_s1, 512, %s28_s17, [#allocation7], %s259_s12, %s259_s12, %s260_s13  }
  0x19   :  { %252 = dma.done.wait [#allocation4], 256  }
  0x1a   :  { %253 = vsyncadd [#allocation4], 4294967040 }
  0x1b   :  { %254 = dma.done.wait [#allocation7], 512  }
  0x1c   :  { %255 = vsyncadd [#allocation7], 4294966784  ;;  %vm44_vm0 = vcmask 523264   ;;  %v262_v0 = vmov 0.0   ;;  %vm55_vm1 = vcmask 261120   ;;  %v54_v1 = vld [vmem:[#allocation6 + $0x18] sm:$0xff] }
  0x1d   :  { %46 = vst.msk [vmem:[#allocation2 + $0x8] sm:$0xff] %vm44_vm0, %v262_v0  ;;  %45 = vst.msk [vmem:[#allocation2] sm:$0xff] %vm44_vm0, %v262_v0  ;;  %v53_v2 = vld [vmem:[#allocation6 + $0x10] sm:$0xff]  ;;  %175 = vmatprep.subr.mxu0 %v54_v1  ;;  %v52_v4 = vld [vmem:[#allocation6 + $0x8] sm:$0xff]  ;;  %s263_s0 = smov [#allocation8]  }
  0x1e   :  { %v49_v3 = vld [vmem:[#allocation3] sm:$0xff]  ;;  %176 = vmatpush3.msra.mxu0 %v54_v1  ;;  %v51_v5 = vld [vmem:[#allocation6] sm:$0xff]  ;;  %v50_v6 = vld [vmem:[#allocation3 + $0x8] sm:$0xff]  ;;  %s154_s1 = sshll.u32 %s263_s0, 4  ;;  %s155_s1 = int_to_ptr.vmem [resolvable:$true] %s154_s1 }
  0x1f   :  { %183 = vmatprep.mubr.msk.f32.mxu0 %vm55_vm1, %v49_v3  ;;  %177 = vmatprep.subr.mxu0 %v53_v2  ;;  %s232_s21 = scalar_lea.vmem %s155_s1, 256  ;;  %p237_p11 = scmp.lt.s32.totalorder %s155_s1, %s155_s1 }
  0x20   :  { %178 = vmatpush3.msra.mxu0 %v53_v2  ;;  %p233_p10 = scmp.ne.s32.totalorder %s155_s1, %s232_s21  ;;  %p238_p12 = scmp.lt.s32.totalorder %s232_s21, %s232_s21 }
  0x21   :  { %179 = vmatprep.subr.mxu0 %v52_v4 }
  0x22   :  { %180 = vmatpush3.msra.mxu0 %v52_v4  ;;  %p239_p13 = por %p238_p12, %p237_p11 }
  0x23   :  { %181 = vmatprep.subr.mxu0 %v51_v5 }
  0x24   :  { %182 = vmatpush3.msra.mxu0 %v51_v5  ;;  %v48_v7 = vld [vmem:[#allocation2 + $0x8] sm:$0xff]  ;;  %v47_v9 = vld [vmem:[#allocation2] sm:$0xff]  ;;  %p240_p0 = pnand %p239_p13, %p233_p10 }
  0x25   :  { %184 = vmatmul.mubr.msk.f32.vlgmr.msra.gmra.mxu0 %vm55_vm1, %v50_v6 }
  0xe5   :  { %v185_v8 = vpop.f32.mrf.mxu0 }
  0xe6   :  { %v138_v10 = vadd.f32 %v185_v8, %v48_v7 }
  0xe7   :  { %v128_v11 = vpop.f32.mrf.mxu0 }
  0xe8   :  { %141 = vst.msk [vmem:[#allocation2 + $0x8] sm:$0xff] %vm44_vm0, %v138_v10  ;;  %v137_v12 = vadd.f32 %v128_v11, %v47_v9 }
  0xea   :  { %140 = vst.msk [vmem:[#allocation2] sm:$0xff] %vm44_vm0, %v137_v12 }
  0xef   :  { %v146_v13 = vld [vmem:[#allocation2 + $0x8] sm:$0xff] }
  0xf0   :  { %148 = vst.msk [vmem:[#allocation8 + $0x8] sm:$0xff] %vm44_vm0, %v146_v13 }
  0xf1   :  { %v145_v14 = vld [vmem:[#allocation2] sm:$0xff] }
  0xf2   :  { %147 = vst.msk [vmem:[#allocation8] sm:$0xff] %vm44_vm0, %v145_v14 }
  0xf3   :  { %243 = shalt.err (!%p240_p0)
}
  0xf4   :  { %160 = dma.vmem_to_hbm [thread:$0]  %s155_s1, 256, %s307_s2, [#allocation5], %s259_s12, %s259_s12, %s260_s13  }
  0xf5   :  { %256 = dma.done.wait [#allocation5], 256  }
  0xf6   :  { %257 = vsyncadd [#allocation5], 4294967040 }
  0xf7   :  { %164 = vsyncpa [#allocation4], 1 }
  0xf8   :  { %165 = vsyncpa [#allocation7], 1 }
  0xf9   :  { %166 = vsyncpa [#allocation5], 1 }

</bundles_post_ra>
